<compile_context>
chip_gen: v7x
topology: tpu7x:2x2x1
jax: 0.10.0
libtpu: 0.0.40
codegen_flags: <defaults>
</compile_context>

<pallas_src>
import functools

import jax
import jax.numpy as jnp
from jax import lax
from jax.experimental import pallas as pl
from jax.experimental.pallas import tpu as pltpu


# ----------------------------- Pallas kernel --------------------------------


def _im2col_rows(src, cat_ref, h_out, pad):
    """Write the 3 H-tap row windows of `src` into the 3 lane bands of cat_ref.

    src     : (bt, h_src, wc) value (already in cat_ref.dtype)
    cat_ref : (bt, h_out, 3*wc) VMEM scratch; band kh holds rows ho+kh-pad of src
              (zeros outside [0, h_src) -> the H halo). W halo lives in the banded weights.
    """
    bt, h_src, wc = src.shape
    for kh in range(3):
        lo = max(0, pad - kh)
        hi = min(h_out, h_src + pad - kh)
        cat_ref[:, lo:hi, kh * wc:(kh + 1) * wc] = src[:, lo + kh - pad:hi + kh - pad, :]
        # Zero only the halo rows of this band (cheap; full interior is overwritten above).
        if lo > 0:
            cat_ref[:, :lo, kh * wc:(kh + 1) * wc] = jnp.zeros((bt, lo, wc), cat_ref.dtype)
        if hi < h_out:
            cat_ref[:, hi:, kh * wc:(kh + 1) * wc] = jnp.zeros(
                (bt, h_out - hi, wc), cat_ref.dtype)


def _mobilev1_stage(cat_ref, a_ref, bdw_ref, p_ref, bpw_ref):
    """DW3x3(+BN+ReLU) as one merged-K banded matmul, PW1x1(+BN+ReLU) as one block-diag matmul."""
    bt, h_out, k3 = cat_ref.shape
    lhs = cat_ref[...].reshape(bt * h_out, k3)                       # bf16 LHS, M = bt*h_out
    y = jnp.dot(lhs, a_ref[...], preferred_element_type=jnp.float32)  # DW + folded BN1 scale
    y = jnp.maximum(y + bdw_ref[...], 0.0)                            # BN1 bias + ReLU
    z = jnp.dot(y.astype(p_ref.dtype), p_ref[...],
                preferred_element_type=jnp.float32)                   # PW + folded BN2 scale
    return jnp.maximum(z + bpw_ref[...], 0.0)                         # BN2 bias + ReLU


def _conv_block_kernel(x_ref, a1_ref, b1_ref, p1_ref, c1_ref,
                       a2_ref, b2_ref, p2_ref, c2_ref,
                       o_ref, cat1_ref, cat2_ref, *, pad):
    # x_ref    : (bt, h_in, w_in*c_in)   batch tile, NHWC with (W, C) folded onto lanes
    # a{s}_ref : (3*W*C, Wo*C)  bf16     merged banded DW weights (BN scale folded in)
    # b{s}_ref : (1, Wo*C)      f32      folded DW-BN bias (tiled over Wo)
    # p{s}_ref : (Wo*Cin, Wo*Cout) bf16  block-diagonal PW weights (BN scale folded in)
    # c{s}_ref : (1, Wo*Cout)   f32      folded PW-BN bias (tiled over Wo)
    # o_ref    : (bt, h_out, w_out*c_out)
    # cat{s}   : (bt, Ho, 3*W*C) bf16    row-im2col scratch for stage s
    bt, _, _ = x_ref.shape
    h1 = cat1_ref.shape[1]
    h2 = o_ref.shape[1]
    wc1 = p1_ref.shape[1]          # = w1 * c_mid (stage-1 output lane width)
    wc2 = o_ref.shape[2]

    # ----- stage 1 (conv1): input -> im2col -> DW+BN+ReLU -> PW+BN+ReLU --------------------
    _im2col_rows(x_ref[...].astype(cat1_ref.dtype), cat1_ref, h1, pad)
    z1 = _mobilev1_stage(cat1_ref, a1_ref, b1_ref, p1_ref, c1_ref)    # (bt*h1, wc1) f32

    # ----- stage 2 (conv2): intermediate stays in VMEM --------------------------------------
    _im2col_rows(z1.reshape(bt, h1, wc1).astype(cat2_ref.dtype), cat2_ref, h2, pad)
    z2 = _mobilev1_stage(cat2_ref, a2_ref, b2_ref, p2_ref, c2_ref)    # (bt*h2, wc2) f32

    o_ref[...] = z2.reshape(bt, h2, wc2).astype(o_ref.dtype)


# --------------------------- weight preparation ------------------------------
# All of this runs ONCE (model load time), not in the per-forward path.


def _fold_bn(gamma, beta, mean, var, eps=1e-5):
    scale = gamma / jnp.sqrt(var + eps)
    bias = beta - mean * scale
    return scale, bias


def _build_dw_band_mats(w_dw_scaled, w_in, w_out, pad):
    """A[kh][wi*C + c, wo*C + c'] = (c == c') * w[kh, wi - wo + pad, c] (0 outside the 3 taps)."""
    c = w_dw_scaled.shape[-1]
    wi = jnp.arange(w_in)[:, None]
    wo = jnp.arange(w_out)[None, :]
    kw = wi - wo + pad
    valid = (kw >= 0) & (kw <= 2)
    kw_c = jnp.clip(kw, 0, 2)
    eye_c = jnp.eye(c, dtype=jnp.float32)
    mats = []
    for kh in range(3):
        sel = jnp.where(valid[:, :, None], w_dw_scaled[kh][kw_c], 0.0)   # (w_in, w_out, C)
        a = sel[:, :, :, None] * eye_c[None, None, :, :]                 # (w_in, w_out, C, C)
        mats.append(jnp.transpose(a, (0, 2, 1, 3)).reshape(w_in * c, w_out * c))
    return jnp.stack(mats)                                               # (3, w_in*C, w_out*C)


def _build_pw_blockdiag(w_pw_scaled, w_out):
    """B[wo'*Cin + c, wo*Cout + co] = (wo' == wo) * w_pw[c, co]."""
    c_in, c_out = w_pw_scaled.shape
    eye_w = jnp.eye(w_out, dtype=jnp.float32)
    b = eye_w[:, None, :, None] * w_pw_scaled[None, :, None, :]          # (w_out, Cin, w_out, Cout)
    return b.reshape(w_out * c_in, w_out * c_out)


def _prepare_stage(p, w_in, pad, weight_dtype):
    c_in = p["dw_w"].shape[-1]
    c_out = p["pw_w"].shape[1]
    w_out = w_in + 2 * pad - 2
    s1, b1 = _fold_bn(p["bn1_gamma"], p["bn1_beta"], p["bn1_mean"], p["bn1_var"])
    s2, b2 = _fold_bn(p["bn2_gamma"], p["bn2_beta"], p["bn2_mean"], p["bn2_var"])
    # merged-K banded DW weights: K ordered (kh, wi, c) to match the im2col lane bands
    a = _build_dw_band_mats(p["dw_w"] * s1, w_in, w_out, pad)
    a = a.reshape(3 * w_in * c_in, w_out * c_in).astype(weight_dtype)
    pw = _build_pw_blockdiag(p["pw_w"] * s2[None, :], w_out).astype(weight_dtype)
    bdw = jnp.tile(b1, w_out).reshape(1, w_out * c_in).astype(jnp.float32)
    bpw = jnp.tile(b2, w_out).reshape(1, w_out * c_out).astype(jnp.float32)
    return a, bdw, pw, bpw, w_out, c_out


def prepare_conv_block_weights(params, w_in, pad, weight_dtype=jnp.bfloat16):
    a1, bdw1, pw1, bpw1, w1, c1 = _prepare_stage(params["conv1"], w_in, pad, weight_dtype)
    a2, bdw2, pw2, bpw2, w2, c2 = _prepare_stage(params["conv2"], w1, pad, weight_dtype)
    return {
        "pad": pad, "w_in": w_in, "c_mid": c1, "c_out": c2,
        "dw1": a1, "bdw1": bdw1, "pw1": pw1, "bpw1": bpw1,
        "dw2": a2, "bdw2": bdw2, "pw2": pw2, "bpw2": bpw2,
    }


# ------------------------------ wrapper -------------------------------------


def _pick_batch_tile(n, target=8):
    bt = min(n, target)
    while n % bt:
        bt -= 1
    return bt


def conv_block_apply(x_nchw, prep):
    """Full _ConvBlock forward: NCHW in, NCHW out. `prep` from prepare_conv_block_weights."""
    pad = prep["pad"]
    n, c_in, h_in, w_in = x_nchw.shape
    assert w_in == prep["w_in"], (w_in, prep["w_in"])
    c_mid, c_out = prep["c_mid"], prep["c_out"]
    h1, w1 = h_in + 2 * pad - 2, w_in + 2 * pad - 2
    h2, w2 = h1 + 2 * pad - 2, w1 + 2 * pad - 2

    # NCHW -> NHWC -> (N, H, W*C): one transpose in HBM, the reshape is a bitcast.
    x = jnp.transpose(x_nchw, (0, 2, 3, 1)).reshape(n, h_in, w_in * c_in)

    bt = _pick_batch_tile(n)
    kern = functools.partial(_conv_block_kernel, pad=pad)
    weight_spec = lambda arr: pl.BlockSpec(arr.shape, lambda i: (0, 0))

    out = pl.pallas_call(
        kern,
        out_shape=jax.ShapeDtypeStruct((n, h2, w2 * c_out), x_nchw.dtype),
        grid=(n // bt,),
        in_specs=[
            pl.BlockSpec((bt, h_in, w_in * c_in), lambda i: (i, 0, 0)),
            weight_spec(prep["dw1"]), weight_spec(prep["bdw1"]),
            weight_spec(prep["pw1"]), weight_spec(prep["bpw1"]),
            weight_spec(prep["dw2"]), weight_spec(prep["bdw2"]),
            weight_spec(prep["pw2"]), weight_spec(prep["bpw2"]),
        ],
        out_specs=pl.BlockSpec((bt, h2, w2 * c_out), lambda i: (i, 0, 0)),
        scratch_shapes=[
            pltpu.VMEM((bt, h1, 3 * w_in * c_in), jnp.bfloat16),   # stage-1 row-im2col
            pltpu.VMEM((bt, h2, 3 * w1 * c_mid), jnp.bfloat16),    # stage-2 row-im2col
        ],
        compiler_params=pltpu.CompilerParams(dimension_semantics=("parallel",)),
    )(x, prep["dw1"], prep["bdw1"], prep["pw1"], prep["bpw1"],
      prep["dw2"], prep["bdw2"], prep["pw2"], prep["bpw2"])

    return jnp.transpose(out.reshape(n, h2, w2, c_out), (0, 3, 1, 2))   # back to NCHW


# --------------------------- parameter init ----------------------------------


def init_mobilev1_params(key, cin, cout):
    ks = jax.random.split(key, 6)
    return {
        "dw_w": 0.2 * jax.random.normal(ks[0], (3, 3, cin), jnp.float32),
        "bn1_gamma": 1.0 + 0.1 * jax.random.normal(ks[1], (cin,), jnp.float32),
        "bn1_beta": 0.1 * jax.random.normal(ks[2], (cin,), jnp.float32),
        "bn1_mean": 0.1 * jax.random.normal(ks[3], (cin,), jnp.float32),
        "bn1_var": jnp.ones((cin,), jnp.float32) * 0.9,
        "pw_w": 0.2 * jax.random.normal(ks[4], (cin, cout), jnp.float32),
        "bn2_gamma": jnp.ones((cout,), jnp.float32),
        "bn2_beta": jnp.zeros((cout,), jnp.float32),
        "bn2_mean": 0.05 * jax.random.normal(ks[5], (cout,), jnp.float32),
        "bn2_var": jnp.ones((cout,), jnp.float32) * 1.1,
    }


def init_conv_block_params(key, in_channels, out_channels):
    k1, k2 = jax.random.split(key)
    return {
        "conv1": init_mobilev1_params(k1, in_channels, out_channels),
        "conv2": init_mobilev1_params(k2, out_channels, out_channels),
    }


# ------------------------ pure-JAX reference (check) --------------------------


def _reference_mobilev1(x_nhwc, p, padding):
    s1, b1 = _fold_bn(p["bn1_gamma"], p["bn1_beta"], p["bn1_mean"], p["bn1_var"])
    c = x_nhwc.shape[-1]
    y = lax.conv_general_dilated(
        x_nhwc, p["dw_w"].reshape(3, 3, 1, c),
        window_strides=(1, 1), padding=[(padding, padding)] * 2,
        dimension_numbers=("NHWC", "HWIO", "NHWC"), feature_group_count=c,
        precision=lax.Precision.HIGHEST)
    y = jnp.maximum(y * s1 + b1, 0.0)
    s2, b2 = _fold_bn(p["bn2_gamma"], p["bn2_beta"], p["bn2_mean"], p["bn2_var"])
    z = lax.conv_general_dilated(
        y, p["pw_w"][None, None], window_strides=(1, 1),
        padding=[(0, 0), (0, 0)], dimension_numbers=("NHWC", "HWIO", "NHWC"),
        precision=lax.Precision.HIGHEST)
    return jnp.maximum(z * s2 + b2, 0.0)


def _reference_conv_block(x_nchw, params, edge_opt=False):
    padding = 0 if edge_opt else 1
    x = jnp.transpose(x_nchw, (0, 2, 3, 1))
    x = _reference_mobilev1(x, params["conv1"], padding)
    x = _reference_mobilev1(x, params["conv2"], padding)
    return jnp.transpose(x, (0, 3, 1, 2))


# --------------------------------- main ---------------------------------------


if __name__ == "__main__":
    key = jax.random.PRNGKey(0)
    k_x, k_p = jax.random.split(key)

    N, C_in, C_out, H, W = 2, 4, 8, 16, 16
    edge_opt = False  # padding=1, spatial size preserved
    pad = 0 if edge_opt else 1

    x = jax.random.normal(k_x, (N, C_in, H, W), jnp.float32)
    params = init_conv_block_params(k_p, C_in, C_out)

    # Weight prep hoisted out of the per-call path: done once, outside jit.
    prep = prepare_conv_block_weights(params, W, pad, weight_dtype=jnp.bfloat16)
    fwd = jax.jit(lambda inp: conv_block_apply(inp, prep))

    out = jax.block_until_ready(fwd(x))
    ref = jax.block_until_ready(_reference_conv_block(x, params, edge_opt=edge_opt))

    assert out.shape == (N, C_out, H, W), out.shape
    # Kernel runs bf16 MXU matmuls (bf16 weights + activations, f32 accumulation) against a
    # HIGHEST-precision f32 XLA-conv reference; with f32 weights the two agree to ~1e-4, so the
    # tolerance below only absorbs the deliberate bf16 quantisation, not layout/indexing bugs
    # (those would show up as O(0.1-1) errors).
    err = float(jnp.max(jnp.abs(out - ref)))
    assert jnp.allclose(out, ref, atol=3e-2, rtol=3e-2), err

    print("KERNEL_OK")
</pallas_src>

<mosaic_0001>
module attributes {stable_mosaic.version = 11 : i64} {
  func.func @_conv_block_kernel(%arg0: i32, %arg1: memref<2x16x64xf32, #tpu.memory_space<vmem>>, %arg2: memref<192x64xbf16, #tpu.memory_space<vmem>>, %arg3: memref<1x64xf32, #tpu.memory_space<vmem>>, %arg4: memref<64x128xbf16, #tpu.memory_space<vmem>>, %arg5: memref<1x128xf32, #tpu.memory_space<vmem>>, %arg6: memref<384x128xbf16, #tpu.memory_space<vmem>>, %arg7: memref<1x128xf32, #tpu.memory_space<vmem>>, %arg8: memref<128x128xbf16, #tpu.memory_space<vmem>>, %arg9: memref<1x128xf32, #tpu.memory_space<vmem>>, %arg10: memref<2x16x128xf32, #tpu.memory_space<vmem>>, %arg11: memref<2x16x192xbf16, #tpu.memory_space<vmem>>, %arg12: memref<2x16x384xbf16, #tpu.memory_space<vmem>>) attributes {dimension_semantics = [#tpu.dimension_semantics<parallel>], iteration_bounds = array<i64: 1>, scalar_prefetch = 0 : i64, scratch_operands = 2 : i64, tpu.core_type = #tpu.core_type<tc>, window_params = [{transform_indices = @transform_0, window_bounds = array<i64: 2, 16, 64>}, {pipeline_mode = #tpu.pipeline_mode<synchronous>, transform_indices = @transform_1, window_bounds = array<i64: 192, 64>}, {pipeline_mode = #tpu.pipeline_mode<synchronous>, transform_indices = @transform_2, window_bounds = array<i64: 1, 64>}, {pipeline_mode = #tpu.pipeline_mode<synchronous>, transform_indices = @transform_3, window_bounds = array<i64: 64, 128>}, {pipeline_mode = #tpu.pipeline_mode<synchronous>, transform_indices = @transform_4, window_bounds = array<i64: 1, 128>}, {pipeline_mode = #tpu.pipeline_mode<synchronous>, transform_indices = @transform_5, window_bounds = array<i64: 384, 128>}, {pipeline_mode = #tpu.pipeline_mode<synchronous>, transform_indices = @transform_6, window_bounds = array<i64: 1, 128>}, {pipeline_mode = #tpu.pipeline_mode<synchronous>, transform_indices = @transform_7, window_bounds = array<i64: 128, 128>}, {pipeline_mode = #tpu.pipeline_mode<synchronous>, transform_indices = @transform_8, window_bounds = array<i64: 1, 128>}, {transform_indices = @transform_9, window_bounds = array<i64: 2, 16, 128>}]} {
    %c0 = arith.constant 0 : index
    %c0_0 = arith.constant 0 : index
    %c0_1 = arith.constant 0 : index
    %0 = vector.load %arg1[%c0, %c0_0, %c0_1] : memref<2x16x64xf32, #tpu.memory_space<vmem>>, vector<2x16x64xf32>
    %1 = arith.truncf %0 : vector<2x16x64xf32> to vector<2x16x64xbf16>
    %2 = vector.extract_strided_slice %1 {offsets = [0, 0, 0], sizes = [2, 15, 64], strides = [1, 1, 1]} : vector<2x16x64xbf16> to vector<2x15x64xbf16>
    %c0_2 = arith.constant 0 : index
    %c1 = arith.constant 1 : index
    %c0_3 = arith.constant 0 : index
    %3 = vector.load %arg11[%c0_2, %c1, %c0_3] : memref<2x16x192xbf16, #tpu.memory_space<vmem>>, vector<2x15x64xbf16>
    tpu.vector_store %arg11[%c0_2, %c1, %c0_3], %2 {strides = array<i32>} : memref<2x16x192xbf16, #tpu.memory_space<vmem>>, vector<2x15x64xbf16>,
    %cst = arith.constant 0.000000e+00 : bf16
    %4 = vector.broadcast %cst : bf16 to vector<2x1x64xbf16>
    %c0_4 = arith.constant 0 : index
    %c0_5 = arith.constant 0 : index
    %c0_6 = arith.constant 0 : index
    %5 = vector.load %arg11[%c0_4, %c0_5, %c0_6] : memref<2x16x192xbf16, #tpu.memory_space<vmem>>, vector<2x1x64xbf16>
    tpu.vector_store %arg11[%c0_4, %c0_5, %c0_6], %4 {strides = array<i32>} : memref<2x16x192xbf16, #tpu.memory_space<vmem>>, vector<2x1x64xbf16>,
    %c0_7 = arith.constant 0 : index
    %c0_8 = arith.constant 0 : index
    %c64 = arith.constant 64 : index
    %6 = vector.load %arg11[%c0_7, %c0_8, %c64] : memref<2x16x192xbf16, #tpu.memory_space<vmem>>, vector<2x16x64xbf16>
    tpu.vector_store %arg11[%c0_7, %c0_8, %c64], %1 {strides = array<i32>} : memref<2x16x192xbf16, #tpu.memory_space<vmem>>, vector<2x16x64xbf16>,
    %7 = vector.extract_strided_slice %1 {offsets = [0, 1, 0], sizes = [2, 15, 64], strides = [1, 1, 1]} : vector<2x16x64xbf16> to vector<2x15x64xbf16>
    %c0_9 = arith.constant 0 : index
    %c0_10 = arith.constant 0 : index
    %c128 = arith.constant 128 : index
    %8 = vector.load %arg11[%c0_9, %c0_10, %c128] : memref<2x16x192xbf16, #tpu.memory_space<vmem>>, vector<2x15x64xbf16>
    tpu.vector_store %arg11[%c0_9, %c0_10, %c128], %7 {strides = array<i32>} : memref<2x16x192xbf16, #tpu.memory_space<vmem>>, vector<2x15x64xbf16>,
    %cst_11 = arith.constant 0.000000e+00 : bf16
    %9 = vector.broadcast %cst_11 : bf16 to vector<2x1x64xbf16>
    %c0_12 = arith.constant 0 : index
    %c15 = arith.constant 15 : index
    %c128_13 = arith.constant 128 : index
    %10 = vector.load %arg11[%c0_12, %c15, %c128_13] : memref<2x16x192xbf16, #tpu.memory_space<vmem>>, vector<2x1x64xbf16>
    tpu.vector_store %arg11[%c0_12, %c15, %c128_13], %9 {strides = array<i32>} : memref<2x16x192xbf16, #tpu.memory_space<vmem>>, vector<2x1x64xbf16>,
    %c0_14 = arith.constant 0 : index
    %c0_15 = arith.constant 0 : index
    %c0_16 = arith.constant 0 : index
    %11 = vector.load %arg11[%c0_14, %c0_15, %c0_16] : memref<2x16x192xbf16, #tpu.memory_space<vmem>>, vector<2x16x192xbf16>
    %12 = vector.shape_cast %11 : vector<2x16x192xbf16> to vector<32x192xbf16>
    %c0_17 = arith.constant 0 : index
    %c0_18 = arith.constant 0 : index
    %13 = vector.load %arg2[%c0_17, %c0_18] : memref<192x64xbf16, #tpu.memory_space<vmem>>, vector<192x64xbf16>
    %cst_19 = arith.constant dense<0.000000e+00> : vector<32x64xf32>
    %14 = tpu.matmul %12, %13, %cst_19 {dimension_numbers = #tpu.dot_dimension_numbers<[1], [0], [0], [1], [0, 0, 1, 1], [], []>} : vector<32x192xbf16>, vector<192x64xbf16>, vector<32x64xf32> -> vector<32x64xf32>
    %c0_20 = arith.constant 0 : index
    %c0_21 = arith.constant 0 : index
    %15 = vector.load %arg3[%c0_20, %c0_21] : memref<1x64xf32, #tpu.memory_space<vmem>>, vector<1x64xf32>
    %16 = vector.broadcast %15 : vector<1x64xf32> to vector<32x64xf32>
    %17 = arith.addf %14, %16 : vector<32x64xf32>
    %cst_22 = arith.constant 0.000000e+00 : f32
    %18 = vector.broadcast %cst_22 : f32 to vector<32x64xf32>
    %19 = arith.maximumf %17, %18 : vector<32x64xf32>
    %20 = arith.truncf %19 : vector<32x64xf32> to vector<32x64xbf16>
    %c0_23 = arith.constant 0 : index
    %c0_24 = arith.constant 0 : index
    %21 = vector.load %arg4[%c0_23, %c0_24] : memref<64x128xbf16, #tpu.memory_space<vmem>>, vector<64x128xbf16>
    %cst_25 = arith.constant dense<0.000000e+00> : vector<32x128xf32>
    %22 = tpu.matmul %20, %21, %cst_25 {dimension_numbers = #tpu.dot_dimension_numbers<[1], [0], [0], [1], [0, 0, 1, 1], [], []>} : vector<32x64xbf16>, vector<64x128xbf16>, vector<32x128xf32> -> vector<32x128xf32>
    %c0_26 = arith.constant 0 : index
    %c0_27 = arith.constant 0 : index
    %23 = vector.load %arg5[%c0_26, %c0_27] : memref<1x128xf32, #tpu.memory_space<vmem>>, vector<1x128xf32>
    %24 = vector.broadcast %23 : vector<1x128xf32> to vector<32x128xf32>
    %25 = arith.addf %22, %24 : vector<32x128xf32>
    %cst_28 = arith.constant 0.000000e+00 : f32
    %26 = vector.broadcast %cst_28 : f32 to vector<32x128xf32>
    %27 = arith.maximumf %25, %26 : vector<32x128xf32>
    %28 = vector.shape_cast %27 : vector<32x128xf32> to vector<2x16x128xf32>
    %29 = arith.truncf %28 : vector<2x16x128xf32> to vector<2x16x128xbf16>
    %30 = vector.extract_strided_slice %29 {offsets = [0, 0, 0], sizes = [2, 15, 128], strides = [1, 1, 1]} : vector<2x16x128xbf16> to vector<2x15x128xbf16>
    %c0_29 = arith.constant 0 : index
    %c1_30 = arith.constant 1 : index
    %c0_31 = arith.constant 0 : index
    %31 = vector.load %arg12[%c0_29, %c1_30, %c0_31] : memref<2x16x384xbf16, #tpu.memory_space<vmem>>, vector<2x15x128xbf16>
    tpu.vector_store %arg12[%c0_29, %c1_30, %c0_31], %30 {strides = array<i32>} : memref<2x16x384xbf16, #tpu.memory_space<vmem>>, vector<2x15x128xbf16>,
    %cst_32 = arith.constant 0.000000e+00 : bf16
    %32 = vector.broadcast %cst_32 : bf16 to vector<2x1x128xbf16>
    %c0_33 = arith.constant 0 : index
    %c0_34 = arith.constant 0 : index
    %c0_35 = arith.constant 0 : index
    %33 = vector.load %arg12[%c0_33, %c0_34, %c0_35] : memref<2x16x384xbf16, #tpu.memory_space<vmem>>, vector<2x1x128xbf16>
    tpu.vector_store %arg12[%c0_33, %c0_34, %c0_35], %32 {strides = array<i32>} : memref<2x16x384xbf16, #tpu.memory_space<vmem>>, vector<2x1x128xbf16>,
    %c0_36 = arith.constant 0 : index
    %c0_37 = arith.constant 0 : index
    %c128_38 = arith.constant 128 : index
    %34 = vector.load %arg12[%c0_36, %c0_37, %c128_38] : memref<2x16x384xbf16, #tpu.memory_space<vmem>>, vector<2x16x128xbf16>
    tpu.vector_store %arg12[%c0_36, %c0_37, %c128_38], %29 {strides = array<i32>} : memref<2x16x384xbf16, #tpu.memory_space<vmem>>, vector<2x16x128xbf16>,
    %35 = vector.extract_strided_slice %29 {offsets = [0, 1, 0], sizes = [2, 15, 128], strides = [1, 1, 1]} : vector<2x16x128xbf16> to vector<2x15x128xbf16>
    %c0_39 = arith.constant 0 : index
    %c0_40 = arith.constant 0 : index
    %c256 = arith.constant 256 : index
    %36 = vector.load %arg12[%c0_39, %c0_40, %c256] : memref<2x16x384xbf16, #tpu.memory_space<vmem>>, vector<2x15x128xbf16>
    tpu.vector_store %arg12[%c0_39, %c0_40, %c256], %35 {strides = array<i32>} : memref<2x16x384xbf16, #tpu.memory_space<vmem>>, vector<2x15x128xbf16>,
    %cst_41 = arith.constant 0.000000e+00 : bf16
    %37 = vector.broadcast %cst_41 : bf16 to vector<2x1x128xbf16>
    %c0_42 = arith.constant 0 : index
    %c15_43 = arith.constant 15 : index
    %c256_44 = arith.constant 256 : index
    %38 = vector.load %arg12[%c0_42, %c15_43, %c256_44] : memref<2x16x384xbf16, #tpu.memory_space<vmem>>, vector<2x1x128xbf16>
    tpu.vector_store %arg12[%c0_42, %c15_43, %c256_44], %37 {strides = array<i32>} : memref<2x16x384xbf16, #tpu.memory_space<vmem>>, vector<2x1x128xbf16>,
    %c0_45 = arith.constant 0 : index
    %c0_46 = arith.constant 0 : index
    %c0_47 = arith.constant 0 : index
    %39 = vector.load %arg12[%c0_45, %c0_46, %c0_47] : memref<2x16x384xbf16, #tpu.memory_space<vmem>>, vector<2x16x384xbf16>
    %40 = vector.shape_cast %39 : vector<2x16x384xbf16> to vector<32x384xbf16>
    %c0_48 = arith.constant 0 : index
    %c0_49 = arith.constant 0 : index
    %41 = vector.load %arg6[%c0_48, %c0_49] : memref<384x128xbf16, #tpu.memory_space<vmem>>, vector<384x128xbf16>
    %cst_50 = arith.constant dense<0.000000e+00> : vector<32x128xf32>
    %42 = tpu.matmul %40, %41, %cst_50 {dimension_numbers = #tpu.dot_dimension_numbers<[1], [0], [0], [1], [0, 0, 1, 1], [], []>} : vector<32x384xbf16>, vector<384x128xbf16>, vector<32x128xf32> -> vector<32x128xf32>
    %c0_51 = arith.constant 0 : index
    %c0_52 = arith.constant 0 : index
    %43 = vector.load %arg7[%c0_51, %c0_52] : memref<1x128xf32, #tpu.memory_space<vmem>>, vector<1x128xf32>
    %44 = vector.broadcast %43 : vector<1x128xf32> to vector<32x128xf32>
    %45 = arith.addf %42, %44 : vector<32x128xf32>
    %cst_53 = arith.constant 0.000000e+00 : f32
    %46 = vector.broadcast %cst_53 : f32 to vector<32x128xf32>
    %47 = arith.maximumf %45, %46 : vector<32x128xf32>
    %48 = arith.truncf %47 : vector<32x128xf32> to vector<32x128xbf16>
    %c0_54 = arith.constant 0 : index
    %c0_55 = arith.constant 0 : index
    %49 = vector.load %arg8[%c0_54, %c0_55] : memref<128x128xbf16, #tpu.memory_space<vmem>>, vector<128x128xbf16>
    %cst_56 = arith.constant dense<0.000000e+00> : vector<32x128xf32>
    %50 = tpu.matmul %48, %49, %cst_56 {dimension_numbers = #tpu.dot_dimension_numbers<[1], [0], [0], [1], [0, 0, 1, 1], [], []>} : vector<32x128xbf16>, vector<128x128xbf16>, vector<32x128xf32> -> vector<32x128xf32>
    %c0_57 = arith.constant 0 : index
    %c0_58 = arith.constant 0 : index
    %51 = vector.load %arg9[%c0_57, %c0_58] : memref<1x128xf32, #tpu.memory_space<vmem>>, vector<1x128xf32>
    %52 = vector.broadcast %51 : vector<1x128xf32> to vector<32x128xf32>
    %53 = arith.addf %50, %52 : vector<32x128xf32>
    %cst_59 = arith.constant 0.000000e+00 : f32
    %54 = vector.broadcast %cst_59 : f32 to vector<32x128xf32>
    %55 = arith.maximumf %53, %54 : vector<32x128xf32>
    %56 = vector.shape_cast %55 : vector<32x128xf32> to vector<2x16x128xf32>
    %c0_60 = arith.constant 0 : index
    %c0_61 = arith.constant 0 : index
    %c0_62 = arith.constant 0 : index
    %57 = vector.load %arg10[%c0_60, %c0_61, %c0_62] : memref<2x16x128xf32, #tpu.memory_space<vmem>>, vector<2x16x128xf32>
    tpu.vector_store %arg10[%c0_60, %c0_61, %c0_62], %56 {strides = array<i32>} : memref<2x16x128xf32, #tpu.memory_space<vmem>>, vector<2x16x128xf32>,
    return
  }
  func.func @transform_0(%arg0: i32) -> (i32, i32, i32) {
    %c0_i32 = arith.constant 0 : i32
    %c0_i32_0 = arith.constant 0 : i32
    %c0_i32_1 = arith.constant 0 : i32
    return %arg0, %c0_i32, %c0_i32_0 : i32, i32, i32
  }
  func.func @transform_1(%arg0: i32) -> (i32, i32) {
    %c0_i32 = arith.constant 0 : i32
    %c0_i32_0 = arith.constant 0 : i32
    %c0_i32_1 = arith.constant 0 : i32
    return %c0_i32, %c0_i32_0 : i32, i32
  }
  func.func @transform_2(%arg0: i32) -> (i32, i32) {
    %c0_i32 = arith.constant 0 : i32
    %c0_i32_0 = arith.constant 0 : i32
    %c0_i32_1 = arith.constant 0 : i32
    return %c0_i32, %c0_i32_0 : i32, i32
  }
  func.func @transform_3(%arg0: i32) -> (i32, i32) {
    %c0_i32 = arith.constant 0 : i32
    %c0_i32_0 = arith.constant 0 : i32
    %c0_i32_1 = arith.constant 0 : i32
    return %c0_i32, %c0_i32_0 : i32, i32
  }
  func.func @transform_4(%arg0: i32) -> (i32, i32) {
    %c0_i32 = arith.constant 0 : i32
    %c0_i32_0 = arith.constant 0 : i32
    %c0_i32_1 = arith.constant 0 : i32
    return %c0_i32, %c0_i32_0 : i32, i32
  }
  func.func @transform_5(%arg0: i32) -> (i32, i32) {
    %c0_i32 = arith.constant 0 : i32
    %c0_i32_0 = arith.constant 0 : i32
    %c0_i32_1 = arith.constant 0 : i32
    return %c0_i32, %c0_i32_0 : i32, i32
  }
  func.func @transform_6(%arg0: i32) -> (i32, i32) {
    %c0_i32 = arith.constant 0 : i32
    %c0_i32_0 = arith.constant 0 : i32
    %c0_i32_1 = arith.constant 0 : i32
    return %c0_i32, %c0_i32_0 : i32, i32
  }
  func.func @transform_7(%arg0: i32) -> (i32, i32) {
    %c0_i32 = arith.constant 0 : i32
    %c0_i32_0 = arith.constant 0 : i32
    %c0_i32_1 = arith.constant 0 : i32
    return %c0_i32, %c0_i32_0 : i32, i32
  }
  func.func @transform_8(%arg0: i32) -> (i32, i32) {
    %c0_i32 = arith.constant 0 : i32
    %c0_i32_0 = arith.constant 0 : i32
    %c0_i32_1 = arith.constant 0 : i32
    return %c0_i32, %c0_i32_0 : i32, i32
  }
  func.func @transform_9(%arg0: i32) -> (i32, i32, i32) {
    %c0_i32 = arith.constant 0 : i32
    %c0_i32_0 = arith.constant 0 : i32
    %c0_i32_1 = arith.constant 0 : i32
    return %arg0, %c0_i32, %c0_i32_0 : i32, i32, i32
  }
}

</mosaic_0001>

<bundles_post_ra>
// kernel: _lambda_.1
= control target key start
LH: loop header
LB: loop body
LE: loop exit
PB: predicated region body
PF: predicated region fallthrough
CT: control target
= control target key end

     0   :  { %v1084_v3 = vmov 0   ;;  %vm56_vm0 = vsmask.f32 7938  ;;  %s1085_s19 = smov 64   ;;  %vm55_vm1 = vcmask 523264   ;;  %v58_v14 = vld [vmem:[#allocation2] sm:$0xff]  ;;  %s1378_s0 = inlined_call_operand.vmem [shape: f32[2,16,64], index: 0, kind: input, shape index: {}]   ;;  %s1379_s1 = inlined_call_operand.vmem [shape: bf16[192,64], index: 1, kind: input, shape index: {}]   ;;  %s1380_s3 = inlined_call_operand.vmem [shape: bf16[64,128], index: 3, kind: input, shape index: {}]   ;;  %s1381_s2 = inlined_call_operand.vmem [shape: f32[1,64], index: 2, kind: input, shape index: {}]   ;;  %s1382_s5 = inlined_call_operand.vmem [shape: bf16[384,128], index: 5, kind: input, shape index: {}]   ;;  %s1383_s7 = inlined_call_operand.vmem [shape: bf16[128,128], index: 7, kind: input, shape index: {}]   ;;  %s1384_s4 = inlined_call_operand.vmem [shape: f32[1,128], index: 4, kind: input, shape index: {}]   ;;  %s1385_s6 = inlined_call_operand.vmem [shape: f32[1,128], index: 6, kind: input, shape index: {}]   ;;  %s1386_s8 = inlined_call_operand.vmem [shape: f32[1,128], index: 8, kind: input, shape index: {}]   ;;  %s1387_s9 = inlined_call_operand.vmem [shape: f32[2,16,128], index: 9, kind: output, shape index: {}]  }
   0x1   :  { %v33_v0 = vld [vmem:[%s1378_s0] sm:$0xff]  ;;  %v34_v1 = vld [vmem:[%s1378_s0 + $0x8] sm:$0xff]  ;;  %v35_v2 = vld [vmem:[%s1378_s0 + $0x10] sm:$0xff]  ;;  %221 = vmatprep.subr.bf16.mxu0 %v1084_v3  ;;  %vm64_vm3 = vcmask 516096   ;;  %vm65_vm4 = vsmask.f32 256 }
   0x2   :  { %v37_v4 = vpack.c.bf16 %v34_v1, %v33_v0  ;;  %v36_v5 = vld [vmem:[%s1378_s0 + $0x18] sm:$0xff]  ;;  %v1036_v7 = vld [vmem:[%s1379_s1] sm:$0xff]   ;;  %v1037_v10 = vld [vmem:[%s1379_s1 + $0x8] sm:$0xff]   ;;  %vm90_vm5 = vsmask.f32 7424  ;;  %vm98_vm8 = vcmask 523271  }
   0x3   :  { %v38_v6 = vpack.c.bf16 %v36_v5, %v35_v2  ;;  %222 = vmatpush1.bf16.msra.mxu0 %v1036_v7  ;;  %vm1158_vm2 = vmand %vm55_vm1, %vm56_vm0  ;;  %v1038_v18 = vld [vmem:[%s1379_s1 + $0x10] sm:$0xff]   ;;  %v1039_v25 = vld [vmem:[%s1379_s1 + $0x18] sm:$0xff]   ;;  %vm99_vm9 = vsmask.f32 7966  ;;  %vm81_vm11 = vcmask 1048064   ;;  %vm392_vm12 = vcmask 1047552  }
   0x4   :  { %75 = vrot.lane.b32.xlu0 %v37_v4, %s1085_s19  ;;  %v40_v8 = vshrl.u32 %v37_v4, 16  ;;  %v43_v9 = vshll.u32 %v37_v4, 16  ;;  %223 = vmatprep.subr.bf16.mxu0 %v1084_v3  ;;  %v95_v26 = vld [vmem:[#allocation2 + $0x18] sm:$0xff]  ;;  %vm91_vm6 = vmand %vm55_vm1, %vm90_vm5  ;;  %v61_v29 = vld [vmem:[#allocation2 + $0x10] sm:$0xff]  ;;  %vm400_vm15 = vcmask 1040384  }
   0x5   :  { %v47_v11 = vshrl.u32 %v38_v6, 16  ;;  %v50_v12 = vshll.u32 %v38_v6, 16  ;;  %vm1175_vm7 = vmand %vm64_vm3, %vm65_vm4  ;;  %v92_v30 = vld [vmem:[#allocation2 + $0x8] sm:$0xff]  ;;  %v1040_v31 = vld [vmem:[%s1379_s1 + $0x20] sm:$0xff]  }
   0x6   :  { %v42_v13 = vrot.slane %v40_v8, 7  ;;  %v84_v19 = vrot.slane %v43_v9, 1  ;;  %v1041_v36 = vld [vmem:[%s1379_s1 + $0x28] sm:$0xff]   ;;  %vm100_vm10 = vmand %vm98_vm8, %vm99_vm9  ;;  %v1042_v39 = vld [vmem:[%s1379_s1 + $0x30] sm:$0xff]  }
   0x7   :  { %v86_v15 = vrot.slane %v50_v12, 1  ;;  %v49_v20 = vrot.slane %v47_v11, 7  ;;  %224 = vmatpush1.bf16.msra.mxu0 %v1037_v10  ;;  %v1043_v44 = vld [vmem:[%s1379_s1 + $0x38] sm:$0xff]   ;;  %v1044_v45 = vld [vmem:[%s1379_s1 + $0x40] sm:$0xff]   ;;  %v1045_v47 = vld [vmem:[%s1379_s1 + $0x48] sm:$0xff]  }
   0x8   :  { %v45_v17 = vor.u32 %v43_v9, %v42_v13  ;;  %77 = vrot.lane.b32.xlu0 %v38_v6, %s1085_s19  ;;  %225 = vmatprep.subr.bf16.mxu0 %v1084_v3  ;;  %v85_v23 = vor.u32 %v84_v19, %v40_v8  ;;  %v1046_v48 = vld [vmem:[%s1379_s1 + $0x50] sm:$0xff]   ;;  %v1047_v49 = vld [vmem:[%s1379_s1 + $0x58] sm:$0xff]   ;;  %v1048_v55 = vld [vmem:[%s1380_s3] sm:$0xff]  }
   0x9   :  { %v87_v22 = vor.u32 %v86_v15, %v47_v11  ;;  %v52_v24 = vor.u32 %v50_v12, %v49_v20  ;;  %982 = vmatprep.subr.bf16.mxu1 %v1048_v55  ;;  %v1049_v56 = vld [vmem:[%s1380_s3 + $0x8] sm:$0xff]   ;;  %v1050_v57 = vld [vmem:[%s1380_s3 + $0x10] sm:$0xff]   ;;  %v1051_v58 = vld [vmem:[%s1380_s3 + $0x18] sm:$0xff]  }
   0xa   :  { %v59_v21 = vsel %vm1158_vm2, %v45_v17, %v58_v14  ;;  %v93_v33 = vsel %vm91_vm6, %v85_v23, %v92_v30  ;;  %983 = vmatpush3.bf16.msra.mxu1 %v1048_v55  ;;  %v872_v59 = vld [vmem:[%s1381_s2] ss:$0 sm:$0xff]  ;;  %v1055_v17 = vld [vmem:[%s1382_s5 + $0x48] sm:$0xff]   ;;  %v1058_v20 = vld [vmem:[%s1382_s5 + $0x50] sm:$0xff]  }
   0xb   :  { %60 = vst [vmem:[#allocation2] sm:$0xff] %v59_v21  ;;  %226 = vmatpush1.bf16.msra.mxu0 %v1038_v18  ;;  %v96_v27 = vsel %vm91_vm6, %v87_v22, %v95_v26  ;;  %v62_v32 = vsel %vm1158_vm2, %v52_v24, %v61_v29  ;;  %94 = vst [vmem:[#allocation2 + $0x8] sm:$0xff] %v93_v33  ;;  %984 = vmatprep.subr.bf16.mxu1 %v1049_v56  ;;  %v1052_v14 = vld [vmem:[%s1382_s5 + $0x40] sm:$0xff]   ;;  %v1056_v18 = vld [vmem:[%s1382_s5 + $0x8] sm:$0xff]  }
   0xc   :  { %227 = vmatprep.subr.bf16.mxu0 %v1084_v3  ;;  %97 = vst [vmem:[#allocation2 + $0x18] sm:$0xff] %v96_v27  ;;  %63 = vst [vmem:[#allocation2 + $0x10] sm:$0xff] %v62_v32  ;;  %v1053_v15 = vld [vmem:[%s1382_s5] sm:$0xff]   ;;  %v1057_v19 = vld [vmem:[%s1382_s5 + $0x88] sm:$0xff]  }
   0xd   :  { %v1054_v16 = vld [vmem:[%s1382_s5 + $0x80] sm:$0xff]   ;;  %v1059_v21 = vld [vmem:[%s1382_s5 + $0x10] sm:$0xff]   ;;  %v1061_v23 = vld [vmem:[%s1382_s5 + $0x58] sm:$0xff]  }
   0xe   :  { %985 = vmatpush3.bf16.msra.mxu1 %v1049_v56  ;;  %v1060_v22 = vld [vmem:[%s1382_s5 + $0x90] sm:$0xff]   ;;  %v1062_v24 = vld [vmem:[%s1382_s5 + $0x18] sm:$0xff]   ;;  %v1064_v26 = vld [vmem:[%s1382_s5 + $0x60] sm:$0xff]  }
   0xf   :  { %228 = vmatpush1.bf16.msra.mxu0 %v1039_v25  ;;  %986 = vmatprep.subr.bf16.mxu1 %v1050_v57  ;;  %v1063_v25 = vld [vmem:[%s1382_s5 + $0x98] sm:$0xff]   ;;  %v1065_v27 = vld [vmem:[%s1382_s5 + $0x20] sm:$0xff]   ;;  %v1067_v29 = vld [vmem:[%s1382_s5 + $0x68] sm:$0xff]  }
  0x10   :  { %229 = vmatprep.subr.bf16.mxu0 %v1084_v3  ;;  %v1066_v28 = vld [vmem:[%s1382_s5 + $0xa0] sm:$0xff]   ;;  %v1068_v30 = vld [vmem:[%s1382_s5 + $0x28] sm:$0xff]   ;;  %v1070_v32 = vld [vmem:[%s1382_s5 + $0x70] sm:$0xff]  }
  0x11   :  { %v1071_v33 = vld [vmem:[%s1382_s5 + $0x30] sm:$0xff]   ;;  %vm1319_vm13 = vmand %vm392_vm12, %vm56_vm0  ;;  %vm423_vm0 = vcmask 1047559  }
  0x12   :  { %v67_v34 = vld [vmem:[#allocation2] sm:$0x1]  ;;  %v101_v41 = vld [vmem:[#allocation2 + $0x8] sm:$0x80]  ;;  %987 = vmatpush3.bf16.msra.mxu1 %v1050_v57  ;;  %vm1324_vm14 = vmand %vm392_vm12, %vm90_vm5 }
  0x13   :  { %v68_v35 = vsel %vm1175_vm7, 0, %v67_v34  ;;  %230 = vmatpush1.bf16.msra.mxu0 %v1040_v31  ;;  %v104_v37 = vld [vmem:[#allocation2 + $0x18] sm:$0x80]  ;;  %v70_v40 = vld [vmem:[#allocation2 + $0x10] sm:$0x1]  ;;  %v102_v43 = vsel %vm100_vm10, 0, %v101_v41  ;;  %988 = vmatprep.subr.bf16.mxu1 %v1051_v58  ;;  %vm424_vm2 = vmand %vm423_vm0, %vm99_vm9 }
  0x14   :  { %69 = vst [vmem:[#allocation2] sm:$0x1] %v68_v35  ;;  %231 = vmatprep.subr.bf16.mxu0 %v1084_v3  ;;  %v105_v38 = vsel %vm100_vm10, 0, %v104_v37  ;;  %v71_v42 = vsel %vm1175_vm7, 0, %v70_v40  ;;  %103 = vst [vmem:[#allocation2 + $0x8] sm:$0x80] %v102_v43 }
  0x15   :  { %106 = vst [vmem:[#allocation2 + $0x18] sm:$0x80] %v105_v38  ;;  %72 = vst [vmem:[#allocation2 + $0x10] sm:$0x1] %v71_v42  ;;  %v1069_v31 = vld [vmem:[%s1382_s5 + $0xa8] sm:$0xff]   ;;  %v1072_v34 = vld [vmem:[%s1382_s5 + $0xb0] sm:$0xff]  }
  0x16   :  { %989 = vmatpush3.bf16.msra.mxu1 %v1051_v58  ;;  %v1073_v35 = vld [vmem:[%s1382_s5 + $0x78] sm:$0xff]   ;;  %v1312_v38 = vld [vmem:[%s1383_s7] sm:$0xff]  }
  0x17   :  { %232 = vmatpush1.bf16.msra.mxu0 %v1041_v36  ;;  %934 = vmatprep.subr.bf16.mxu1 %v1052_v14  ;;  %v1075_v36 = vld [vmem:[%s1382_s5 + $0xb8] sm:$0xff]  }
  0x18   :  { %233 = vmatprep.subr.bf16.mxu0 %v1084_v3  ;;  %v1074_v37 = vld [vmem:[%s1382_s5 + $0x38] sm:$0xff]  }
  0x1b   :  { %234 = vmatpush1.bf16.msra.mxu0 %v1042_v39  ;;  %v108_v46 = vld [vmem:[#allocation2 + $0x8] sm:$0xff]  ;;  %v887_v39 = vld [vmem:[%s1384_s4] ss:$0 sm:$0xff] }
  0x1c   :  { %235 = vmatprep.subr.bf16.mxu0 %v1084_v3  ;;  %885 = vmatprep.mubr.msk.bf16.mxu0 %vm55_vm1, %v108_v46  ;;  %v110_v52 = vld [vmem:[#allocation2 + $0x18] sm:$0xff] }
  0x1f   :  { %236 = vmatpush1.bf16.msra.mxu0 %v1043_v44 }
  0x20   :  { %237 = vmatprep.subr.bf16.mxu0 %v1084_v3 }
  0x23   :  { %238 = vmatpush1.bf16.msra.mxu0 %v1044_v45 }
  0x24   :  { %239 = vmatprep.subr.bf16.mxu0 %v1084_v3 }
  0x27   :  { %240 = vmatpush1.bf16.msra.mxu0 %v1045_v47 }
  0x28   :  { %241 = vmatprep.subr.bf16.mxu0 %v1084_v3 }
  0x2b   :  { %242 = vmatpush1.bf16.msra.mxu0 %v1046_v48 }
  0x2c   :  { %243 = vmatprep.subr.bf16.mxu0 %v1084_v3 }
  0x2f   :  { %244 = vmatpush1.bf16.msra.mxu0 %v1047_v49 }
  0x30   :  { %994 = vmatprep.subr.bf16.mxu0 %v1054_v16 }
  0x76   :  { %v76_v50 = vpop.permute.xlu0 %75 }
  0x77   :  { %82 = vst.msk [vmem:[#allocation2] sm:$0xff] %vm81_vm11, %v76_v50 }
  0x7a   :  { %v78_v51 = vpop.permute.xlu0 %77 }
  0x7b   :  { %83 = vst.msk [vmem:[#allocation2 + $0x10] sm:$0xff] %vm81_vm11, %v78_v51 }
  0x7e   :  { %v107_v53 = vld [vmem:[#allocation2] sm:$0xff] }
  0x7f   :  { %254 = vmatmul.mubr.bf16.vlgmr.msra.gmra.mrb[0].mxu0 %v107_v53 }
  0x80   :  { %886 = vmatprep.mubr.msk.bf16.mxu0 %vm55_vm1, %v110_v52  ;;  %995 = vmatpush3.bf16.msra.mxu0 %v1054_v16 }
  0x81   :  { %996 = vmatprep.subr.bf16.mxu0 %v1057_v19 }
  0x82   :  { %v109_v54 = vld [vmem:[#allocation2 + $0x10] sm:$0xff] }
  0x84   :  { %997 = vmatpush3.bf16.msra.mxu0 %v1057_v19 }
  0x85   :  { %998 = vmatprep.subr.bf16.mxu0 %v1060_v22 }
  0x87   :  { %262 = vmatmul.mubr.bf16.gmra.mrb[4].mxu0 %v109_v54 }
  0x88   :  { %999 = vmatpush3.bf16.msra.mxu0 %v1060_v22  ;;  %v1077_v22 = vld [vmem:[%s1383_s7 + $0x8] sm:$0xff]  }
  0x89   :  { %1000 = vmatprep.subr.bf16.mxu0 %v1063_v25 }
  0x8c   :  { %1001 = vmatpush3.bf16.msra.mxu0 %v1063_v25 }
  0x8d   :  { %1002 = vmatprep.subr.bf16.mxu0 %v1066_v28 }
  0x90   :  { %1003 = vmatpush3.bf16.msra.mxu0 %v1066_v28  ;;  %v1081_v28 = vld [vmem:[%s1383_s7 + $0x28] sm:$0xff]  }
  0x91   :  { %1004 = vmatprep.subr.bf16.mxu0 %v1069_v31 }
  0x94   :  { %1005 = vmatpush3.bf16.msra.mxu0 %v1069_v31 }
  0x95   :  { %1006 = vmatprep.subr.bf16.mxu0 %v1072_v34 }
  0x98   :  { %1007 = vmatpush3.bf16.msra.mxu0 %v1072_v34  ;;  %v894_v34 = vld [vmem:[%s1385_s6] ss:$0 sm:$0xff] }
  0x99   :  { %1008 = vmatprep.subr.bf16.mxu0 %v1075_v36 }
  0x9c   :  { %1009 = vmatpush3.bf16.msra.mxu0 %v1075_v36 }
 0x152   :  { %v255_v60 = vpop.f32.mrb[0].mxu0 }
 0x153   :  { %v256_v61 = vadd.f32 %v872_v59, %v255_v60  ;;  %v257_v62 = vpop.f32.mrb[1].mxu0 }
 0x154   :  { %v258_v63 = vpop.f32.mrb[2].mxu0  ;;  %v919_v62 = vld [vmem:[%s1386_s8] ss:$0 sm:$0xff] }
 0x155   :  { %v259_v0 = vadd.f32 %v872_v59, %v258_v63  ;;  %v260_v1 = vpop.f32.mrb[3].mxu0  ;;  %v270_v2 = vmax.f32 %v256_v61, 0.0  ;;  %v397_v61 = vld [vmem:[#allocation3 + $0x18] sm:$0xff]  ;;  %v420_v63 = vld [vmem:[#allocation3 + $0x28] sm:$0xff] }
 0x157   :  { %v271_v3 = vmax.f32 %v259_v0, 0.0 }
 0x159   :  { %v274_v4 = vpack.c.bf16 %v271_v3, %v270_v2 }
 0x15a   :  { %v263_v5 = vpop.f32.mrb[4].mxu0 }
 0x15b   :  { %v264_v6 = vadd.f32 %v872_v59, %v263_v5  ;;  %v265_v7 = vpop.f32.mrb[5].mxu0  ;;  %990 = vmatprep.mubr.msk.bf16.mxu1 %vm55_vm1, %v274_v4  ;;  %v394_v4 = vld [vmem:[#allocation3] sm:$0xff]  ;;  %v417_v5 = vld [vmem:[#allocation3 + $0x10] sm:$0xff] }
 0x15c   :  { %v266_v8 = vpop.f32.mrb[6].mxu0 }
 0x15d   :  { %v267_v9 = vadd.f32 %v872_v59, %v266_v8  ;;  %v268_v10 = vpop.f32.mrb[7].mxu0  ;;  %v272_v11 = vmax.f32 %v264_v6, 0.0 }
 0x15f   :  { %v273_v12 = vmax.f32 %v267_v9, 0.0 }
 0x161   :  { %v275_v13 = vpack.c.bf16 %v273_v12, %v272_v11 }
 0x163   :  { %991 = vmatmul.mubr.msk.bf16.vlgmr.msra.gmra.mrb[0].mxu1 %vm55_vm1, %v275_v13  ;;  %vm401_vm1 = vmand %vm400_vm15, %vm65_vm4 }
 0x164   :  { %935 = vmatpush3.bf16.msra.mxu1 %v1053_v15 }
 0x165   :  { %936 = vmatprep.subr.bf16.mxu1 %v1055_v17 }
 0x168   :  { %937 = vmatpush3.bf16.msra.mxu1 %v1056_v18 }
 0x169   :  { %938 = vmatprep.subr.bf16.mxu1 %v1058_v20 }
 0x16c   :  { %939 = vmatpush3.bf16.msra.mxu1 %v1059_v21 }
 0x16d   :  { %940 = vmatprep.subr.bf16.mxu1 %v1061_v23 }
 0x170   :  { %941 = vmatpush3.bf16.msra.mxu1 %v1062_v24  ;;  %v1078_v24 = vld [vmem:[%s1383_s7 + $0x10] sm:$0xff]  }
 0x171   :  { %942 = vmatprep.subr.bf16.mxu1 %v1064_v26  ;;  %v1079_v26 = vld [vmem:[%s1383_s7 + $0x18] sm:$0xff]  }
 0x174   :  { %943 = vmatpush3.bf16.msra.mxu1 %v1065_v27  ;;  %v1080_v27 = vld [vmem:[%s1383_s7 + $0x20] sm:$0xff]  }
 0x175   :  { %944 = vmatprep.subr.bf16.mxu1 %v1067_v29  ;;  %v1082_v29 = vld [vmem:[%s1383_s7 + $0x30] sm:$0xff]  }
 0x178   :  { %945 = vmatpush3.bf16.msra.mxu1 %v1068_v30  ;;  %v1083_v30 = vld [vmem:[%s1383_s7 + $0x38] sm:$0xff]  }
 0x179   :  { %946 = vmatprep.subr.bf16.mxu1 %v1070_v32 }
 0x17c   :  { %947 = vmatpush3.bf16.msra.mxu1 %v1071_v33 }
 0x17d   :  { %948 = vmatprep.subr.bf16.mxu1 %v1073_v35 }
 0x180   :  { %949 = vmatpush3.bf16.msra.mxu1 %v1074_v37 }
 0x181   :  { %1014 = vmatprep.subr.bf16.mxu1 %v1312_v38 }
 0x236   :  { %v992_v40 = vpop.f32.mrb[0].mxu1 }
 0x237   :  { %v364_v41 = vadd.f32 %v992_v40, %v887_v39  ;;  %v355_v42 = vpop.f32.mrb[1].mxu1 }
 0x238   :  { %v356_v43 = vadd.f32 %v887_v39, %v355_v42  ;;  %v993_v44 = vpop.f32.mrb[2].mxu1 }
 0x239   :  { %v367_v45 = vadd.f32 %v993_v44, %v887_v39  ;;  %v358_v46 = vpop.f32.mrb[3].mxu1  ;;  %v372_v48 = vmax.f32 %v364_v41, 0.0 }
 0x23a   :  { %v359_v47 = vadd.f32 %v887_v39, %v358_v46  ;;  %v370_v50 = vmax.f32 %v356_v43, 0.0 }
 0x23b   :  { %v373_v49 = vmax.f32 %v367_v45, 0.0 }
 0x23c   :  { %v371_v51 = vmax.f32 %v359_v47, 0.0 }
 0x23d   :  { %v375_v52 = vpack.c.bf16 %v373_v49, %v372_v48 }
 0x23e   :  { %v374_v53 = vpack.c.bf16 %v371_v51, %v370_v50 }
 0x23f   :  { %v384_v54 = vshrl.u32 %v375_v52, 16  ;;  %v387_v55 = vshll.u32 %v375_v52, 16 }
 0x240   :  { %v377_v56 = vshrl.u32 %v374_v53, 16  ;;  %v380_v57 = vshll.u32 %v374_v53, 16  ;;  %668 = vmatprep.mubr.bf16.mxu1 %v374_v53 }
 0x241   :  { %v386_v58 = vrot.slane %v384_v54, 7  ;;  %v412_v60 = vrot.slane %v387_v55, 1 }
 0x242   :  { %v379_v0 = vrot.slane %v377_v56, 7  ;;  %v410_v1 = vrot.slane %v380_v57, 1 }
 0x243   :  { %v389_v2 = vor.u32 %v387_v55, %v386_v58  ;;  %v413_v3 = vor.u32 %v412_v60, %v384_v54 }
 0x244   :  { %v382_v6 = vor.u32 %v380_v57, %v379_v0  ;;  %v411_v7 = vor.u32 %v410_v1, %v377_v56 }
 0x245   :  { %v398_v8 = vsel %vm1319_vm13, %v389_v2, %v397_v61  ;;  %v421_v9 = vsel %vm1324_vm14, %v413_v3, %v420_v63 }
 0x246   :  { %399 = vst [vmem:[#allocation3 + $0x18] sm:$0xff] %v398_v8  ;;  %422 = vst [vmem:[#allocation3 + $0x28] sm:$0xff] %v421_v9  ;;  %v395_v10 = vsel %vm1319_vm13, %v382_v6, %v394_v4  ;;  %v418_v11 = vsel %vm1324_vm14, %v411_v7, %v417_v5 }
 0x247   :  { %396 = vst [vmem:[#allocation3] sm:$0xff] %v395_v10  ;;  %419 = vst [vmem:[#allocation3 + $0x10] sm:$0xff] %v418_v11 }
 0x24d   :  { %v405_v12 = vld [vmem:[#allocation3 + $0x18] sm:$0x1]  ;;  %v428_v13 = vld [vmem:[#allocation3 + $0x28] sm:$0x80] }
 0x24e   :  { %v406_v14 = vsel %vm401_vm1, 0, %v405_v12  ;;  %v429_v15 = vsel %vm424_vm2, 0, %v428_v13  ;;  %v402_v16 = vld [vmem:[#allocation3] sm:$0x1]  ;;  %v425_v17 = vld [vmem:[#allocation3 + $0x10] sm:$0x80] }
 0x24f   :  { %407 = vst [vmem:[#allocation3 + $0x18] sm:$0x1] %v406_v14  ;;  %430 = vst [vmem:[#allocation3 + $0x28] sm:$0x80] %v429_v15  ;;  %v403_v18 = vsel %vm401_vm1, 0, %v402_v16  ;;  %v426_v19 = vsel %vm424_vm2, 0, %v425_v17 }
 0x250   :  { %404 = vst [vmem:[#allocation3] sm:$0x1] %v403_v18  ;;  %427 = vst [vmem:[#allocation3 + $0x10] sm:$0x80] %v426_v19 }
 0x256   :  { %v436_v23 = vld [vmem:[#allocation3 + $0x28] sm:$0xff]  ;;  %v434_v25 = vld [vmem:[#allocation3 + $0x18] sm:$0xff] }
 0x257   :  { %v431_v20 = vld [vmem:[#allocation3] sm:$0xff]  ;;  %v433_v21 = vld [vmem:[#allocation3 + $0x10] sm:$0xff] }
 0x258   :  { %669 = vmatmul.mubr.bf16.vlgmr.msra.gmra.mrb[4].mxu1 %v431_v20  ;;  %1010 = vmatprep.mubr.bf16.mxu0 %v433_v21 }
 0x259   :  { %676 = vmatprep.mubr.bf16.mxu1 %v375_v52  ;;  %1011 = vmatmul.mubr.bf16.vlgmr.msra.gmra.mrb[8].mxu0 %v436_v23 }
 0x25a   :  { %1015 = vmatpush3.bf16.msra.mxu1 %v1312_v38 }
 0x25b   :  { %1016 = vmatprep.subr.bf16.mxu1 %v1077_v22 }
 0x25e   :  { %1017 = vmatpush3.bf16.msra.mxu1 %v1077_v22 }
 0x25f   :  { %1018 = vmatprep.subr.bf16.mxu1 %v1078_v24 }
 0x260   :  { %677 = vmatmul.mubr.bf16.gmra.mrb[8].mxu1 %v434_v25 }
 0x262   :  { %1019 = vmatpush3.bf16.msra.mxu1 %v1078_v24 }
 0x263   :  { %1020 = vmatprep.subr.bf16.mxu1 %v1079_v26 }
 0x266   :  { %1021 = vmatpush3.bf16.msra.mxu1 %v1079_v26 }
 0x267   :  { %1022 = vmatprep.subr.bf16.mxu1 %v1080_v27 }
 0x26a   :  { %1023 = vmatpush3.bf16.msra.mxu1 %v1080_v27 }
 0x26b   :  { %1024 = vmatprep.subr.bf16.mxu1 %v1081_v28 }
 0x26e   :  { %1025 = vmatpush3.bf16.msra.mxu1 %v1081_v28 }
 0x26f   :  { %1026 = vmatprep.subr.bf16.mxu1 %v1082_v29 }
 0x272   :  { %1027 = vmatpush3.bf16.msra.mxu1 %v1082_v29 }
 0x273   :  { %1028 = vmatprep.subr.bf16.mxu1 %v1083_v30 }
 0x276   :  { %1029 = vmatpush3.bf16.msra.mxu1 %v1083_v30 }
 0x32b   :  { %v950_v31 = vpop.f32.mrb[4].mxu1 }
 0x32c   :  { %v951_v32 = vpop.f32.mrb[5].mxu1  ;;  %v1012_v33 = vpop.f32.mrb[8].mxu0 }
 0x32d   :  { %v952_v35 = vadd.f32 %v951_v32, %v950_v31  ;;  %v953_v36 = vpop.f32.mrb[6].mxu1  ;;  %v719_v37 = vpop.f32.mrb[9].mxu0 }
 0x32e   :  { %v954_v38 = vpop.f32.mrb[7].mxu1  ;;  %v1013_v39 = vpop.f32.mrb[10].mxu0 }
 0x32f   :  { %v671_v40 = vadd.f32 %v952_v35, %v894_v34  ;;  %v955_v41 = vadd.f32 %v954_v38, %v953_v36  ;;  %v722_v42 = vpop.f32.mrb[11].mxu0 }
 0x331   :  { %v720_v43 = vadd.f32 %v719_v37, %v671_v40  ;;  %v674_v44 = vadd.f32 %v955_v41, %v894_v34 }
 0x333   :  { %v723_v45 = vadd.f32 %v722_v42, %v674_v44  ;;  %v956_v46 = vpop.f32.mrb[8].mxu1  ;;  %v734_v48 = vmax.f32 %v720_v43, 0.0 }
 0x334   :  { %v957_v47 = vpop.f32.mrb[9].mxu1 }
 0x335   :  { %v735_v49 = vmax.f32 %v723_v45, 0.0  ;;  %v958_v50 = vadd.f32 %v957_v47, %v956_v46  ;;  %v959_v51 = vpop.f32.mrb[10].mxu1 }
 0x336   :  { %v960_v52 = vpop.f32.mrb[11].mxu1 }
 0x337   :  { %v738_v53 = vpack.c.bf16 %v735_v49, %v734_v48  ;;  %v679_v54 = vadd.f32 %v958_v50, %v894_v34  ;;  %v961_v55 = vadd.f32 %v960_v52, %v959_v51 }
 0x339   :  { %v728_v56 = vadd.f32 %v1012_v33, %v679_v54  ;;  %v682_v57 = vadd.f32 %v961_v55, %v894_v34  ;;  %1030 = vmatprep.mubr.bf16.mxu1 %v738_v53 }
 0x33b   :  { %v731_v58 = vadd.f32 %v1013_v39, %v682_v57  ;;  %v736_v59 = vmax.f32 %v728_v56, 0.0 }
 0x33d   :  { %v737_v60 = vmax.f32 %v731_v58, 0.0 }
 0x33f   :  { %v739_v61 = vpack.c.bf16 %v737_v60, %v736_v59 }
 0x341   :  { %1031 = vmatmul.mubr.bf16.vlgmr.msra.gmra.mrb[12].mxu1 %v739_v61 }
 0x414   :  { %v1032_v63 = vpop.f32.mrb[12].mxu1 }
 0x415   :  { %v854_v0 = vadd.f32 %v1032_v63, %v919_v62  ;;  %v845_v1 = vpop.f32.mrb[13].mxu1 }
 0x416   :  { %v846_v2 = vadd.f32 %v919_v62, %v845_v1  ;;  %v1033_v3 = vpop.f32.mrb[14].mxu1 }
 0x417   :  { %v862_v4 = vmax.f32 %v854_v0, 0.0  ;;  %v857_v5 = vadd.f32 %v1033_v3, %v919_v62  ;;  %v848_v6 = vpop.f32.mrb[15].mxu1 }
 0x418   :  { %v860_v7 = vmax.f32 %v846_v2, 0.0  ;;  %v849_v8 = vadd.f32 %v919_v62, %v848_v6 }
 0x419   :  { %866 = vst [vmem:[%s1387_s9 + $0x10] sm:$0xff] %v862_v4  ;;  %v863_v9 = vmax.f32 %v857_v5, 0.0 }
 0x41a   :  { %864 = vst [vmem:[%s1387_s9] sm:$0xff] %v860_v7  ;;  %v861_v10 = vmax.f32 %v849_v8, 0.0 }
 0x41b   :  { %867 = vst [vmem:[%s1387_s9 + $0x18] sm:$0xff] %v863_v9 }
 0x41c   :  { %865 = vst [vmem:[%s1387_s9 + $0x8] sm:$0xff] %v861_v10 }

</bundles_post_ra>
